<compile_context>
chip_gen: v7x
topology: tpu7x:2x2x1
jax: 0.10.0
libtpu: 0.0.40
codegen_flags: <defaults>
</compile_context>

<pallas_src>
import functools

import jax
import jax.numpy as jnp
from jax.experimental import pallas as pl
from jax.experimental.pallas import tpu as pltpu


def _pick_row_tile(R):
    # Mem-bound tiling: bigger tiles amortize the ~0.35us/grid-step overhead.
    for t in (1024, 512, 256, 128, 64, 32, 16, 8):
        if R % t == 0:
            return t
    # TODO(synk): non-divisible R would need a pl.cdiv grid + masked tail;
    # not reachable for the row counts (R = B*N) this module is used with.
    return R


def _pick_batch_block(B, N, M):
    """Batch elements processed per grid step in kernel 1.

    Feeds the projection matmuls with more rows (MXU utilization) and cuts
    per-step overhead at small N/M; falls back to 1 for long sequences so the
    per-step activations (and VMEM footprint) stay small.
    """
    cap = max(1, 256 // max(N, M))
    best = 1
    for d in range(1, B + 1):
        if B % d == 0 and d <= cap:
            best = d
    return best


# ---------------- fused q/kv projection + per-head attention ----------------

def _fused_attn_kernel(q_ref, kv_ref, wq_ref, bq_ref, wkv_ref, bkv_ref, o_ref,
                       *, num_heads, head_dim, scale, bblk):
    C = num_heads * head_dim
    N = q_ref.shape[1]
    M = kv_ref.shape[1]

    # Projections: bf16 MXU matmuls, f32 accumulation, f32 bias add.
    # The 1/sqrt(hd) scale is folded into q here (one multiply on (rows, C)),
    # and the f32 intermediates die immediately after the bf16 cast.
    xq = q_ref[...].reshape(bblk * N, C).astype(jnp.bfloat16)
    q_bf = ((jnp.dot(xq, wq_ref[...], preferred_element_type=jnp.float32)
             + bq_ref[...]) * scale).astype(jnp.bfloat16)        # (bblk*N, C)

    xkv = kv_ref[...].reshape(bblk * M, C).astype(jnp.bfloat16)
    kv_bf = (jnp.dot(xkv, wkv_ref[...], preferred_element_type=jnp.float32)
             + bkv_ref[...]).astype(jnp.bfloat16)                # (bblk*M, 2C)

    # Static (batch-in-block, head) loop: bblk and H are small compile-time
    # constants; each iteration ends with its store so its (N, M) softmax
    # temporaries are not needed past the iteration.
    # NOTE: full (N, M) scores per head; for very long sequences this should
    # be tiled over M (flash-style online softmax) to respect v7x's 64 MiB.
    for ib in range(bblk):
        qb = q_bf[ib * N:(ib + 1) * N, :]                        # (N, C)
        kb = kv_bf[ib * M:(ib + 1) * M, :]                       # (M, 2C)
        for h in range(num_heads):
            lo = h * head_dim
            qh = qb[:, lo:lo + head_dim]                         # (N, hd)
            kh = kb[:, lo:lo + head_dim]                         # (M, hd)
            vh = kb[:, C + lo:C + lo + head_dim]                 # (M, hd)

            # q @ k^T without materializing a transpose (contract last dims).
            s = jax.lax.dot_general(
                qh, kh, (((1,), (1,)), ((), ())),
                preferred_element_type=jnp.float32)              # (N, M) f32

            m = jnp.max(s, axis=-1, keepdims=True)
            p = jnp.exp(s - m)
            denom = jnp.sum(p, axis=-1, keepdims=True)
            o = jnp.dot(p.astype(jnp.bfloat16), vh,
                        preferred_element_type=jnp.float32)      # (N, hd)
            # EUP reciprocal; swap for exact division if strict parity with a
            # pure-f32 torch reference is required.
            o_ref[h, ib] = (o * pl.reciprocal(denom, approx=True)
                            ).astype(o_ref.dtype)


def fused_qkv_attention(q, kv, wq_bf, bq, wkv_bf, bkv, num_heads, scale):
    B, N, C = q.shape
    _, M, _ = kv.shape
    hd = C // num_heads
    bblk = _pick_batch_block(B, N, M)
    kernel = functools.partial(_fused_attn_kernel, num_heads=num_heads,
                               head_dim=hd, scale=scale, bblk=bblk)
    # NOTE: resident weights/biases (constant index_map) are still
    # double-buffered by default; pipeline_mode=pl.Buffered(1) can reclaim
    # that VMEM on VMEM-tight parts (v7x, 64 MiB) if needed.
    return pl.pallas_call(
        kernel,
        grid=(B // bblk,),
        in_specs=[
            pl.BlockSpec((bblk, N, C), lambda b: (b, 0, 0)),      # q
            pl.BlockSpec((bblk, M, C), lambda b: (b, 0, 0)),      # kv
            pl.BlockSpec((C, C), lambda b: (0, 0)),               # wq (resident)
            pl.BlockSpec((1, C), lambda b: (0, 0)),               # bq
            pl.BlockSpec((C, 2 * C), lambda b: (0, 0)),           # wkv (resident)
            pl.BlockSpec((1, 2 * C), lambda b: (0, 0)),           # bkv
        ],
        out_specs=pl.BlockSpec((num_heads, bblk, N, hd),
                               lambda b: (0, b, 0, 0)),
        # bf16 intermediate: halves HBM writeback here and the read in the
        # proj+LayerNorm kernel.
        out_shape=jax.ShapeDtypeStruct((num_heads, B, N, hd), jnp.bfloat16),
        compiler_params=pltpu.CompilerParams(
            dimension_semantics=("parallel",)),
    )(q, kv, wq_bf, bq, wkv_bf, bkv)


# ------------------- fused output projection + LayerNorm --------------------

def _proj_ln_kernel(x_ref, w_ref, b_ref, g_ref, beta_ref, o_ref, *, eps):
    y = (jnp.dot(x_ref[...].astype(jnp.bfloat16), w_ref[...],
                 preferred_element_type=jnp.float32)
         + b_ref[...])                                           # (tR, C) f32
    mu = jnp.mean(y, axis=-1, keepdims=True)
    var = jnp.mean((y - mu) ** 2, axis=-1, keepdims=True)        # biased, as torch
    o_ref[...] = (y - mu) * jax.lax.rsqrt(var + eps) * g_ref[...] + beta_ref[...]


def proj_layernorm(x, w_bf, b, gamma, beta, eps=1e-5):
    R, C = x.shape
    tR = _pick_row_tile(R)
    return pl.pallas_call(
        functools.partial(_proj_ln_kernel, eps=eps),
        grid=(R // tR,),
        in_specs=[
            pl.BlockSpec((tR, C), lambda i: (i, 0)),
            pl.BlockSpec((C, C), lambda i: (0, 0)),              # wp (resident)
            pl.BlockSpec((1, C), lambda i: (0, 0)),
            pl.BlockSpec((1, C), lambda i: (0, 0)),
            pl.BlockSpec((1, C), lambda i: (0, 0)),
        ],
        out_specs=pl.BlockSpec((tR, C), lambda i: (i, 0)),       # lane-dense
        out_shape=jax.ShapeDtypeStruct((R, C), jnp.float32),
        compiler_params=pltpu.CompilerParams(
            dimension_semantics=("parallel",)),
    )(x, w_bf, b, gamma, beta)


# ----------------------------- module wrapper --------------------------------

def init_params(key, dim, num_heads):
    """Deterministic init mirroring the module's __init__ shapes."""
    del num_heads
    ks = jax.random.split(key, 6)

    def kaiming_uniform(k, fan_in, shape):
        # kaiming_uniform_(mode='fan_in', nonlinearity='relu'):
        # bound = sqrt(2) * sqrt(3 / fan_in) = sqrt(6 / fan_in)
        bound = (6.0 / fan_in) ** 0.5
        return jax.random.uniform(k, shape, jnp.float32, -bound, bound)

    def bias_init(k, fan_in, shape):
        bound = 1.0 / (fan_in ** 0.5)
        return jax.random.uniform(k, shape, jnp.float32, -bound, bound)

    return {
        # stored as (in, out)  (== torch Linear weight transposed)
        "wq": kaiming_uniform(ks[0], dim, (dim, dim)),
        "bq": bias_init(ks[1], dim, (1, dim)),
        "wkv": kaiming_uniform(ks[2], dim, (dim, 2 * dim)),
        "bkv": bias_init(ks[3], dim, (1, 2 * dim)),
        "wp": kaiming_uniform(ks[4], dim, (dim, dim)),
        "bp": bias_init(ks[5], dim, (1, dim)),
        # LayerNorm affine params (torch default init)
        "gamma": jnp.ones((1, dim), jnp.float32),
        "beta": jnp.zeros((1, dim), jnp.float32),
    }


def attention_via_tasks_forward(params, q, kv, num_heads):
    B, N, C = q.shape
    _, M, _ = kv.shape
    hd = C // num_heads
    scale = hd ** (-0.5)

    # Weights pre-cast to bf16 once (halves weight traffic, full-rate MXU).
    wq_bf = params["wq"].astype(jnp.bfloat16)
    wkv_bf = params["wkv"].astype(jnp.bfloat16)
    wp_bf = params["wp"].astype(jnp.bfloat16)

    # Fused q/kv projection + attention.  Output is bf16 (H, B, N, hd) whose
    # row-major flattening equals torch's
    #   (attn @ v)            -> (1,B,H,N,hd)
    #   .transpose(1,2)       -> (1,H,B,N,hd)
    #   .reshape(B,N,C)
    # so the head-merge below is a pure (free) XLA reshape.
    o = fused_qkv_attention(q, kv, wq_bf, params["bq"], wkv_bf, params["bkv"],
                            num_heads, scale)                    # (H, B, N, hd)
    x = o.reshape(B * N, C)

    # Fused out-projection + LayerNorm (row-tiled, lane-dense C-wide tiles).
    x = proj_layernorm(x, wp_bf, params["bp"], params["gamma"], params["beta"])
    return x.reshape(B, N, C)


# ---------------------------------- main --------------------------------------

if __name__ == "__main__":
    B, N, M, C = 2, 8, 8, 32
    num_heads = 4

    key = jax.random.PRNGKey(0)
    kq, kkv, kp = jax.random.split(key, 3)
    q_in = jax.random.normal(kq, (B, N, C), jnp.float32)
    kv_in = jax.random.normal(kkv, (B, M, C), jnp.float32)
    params = init_params(kp, C, num_heads)

    fwd = jax.jit(functools.partial(attention_via_tasks_forward,
                                    num_heads=num_heads))
    out = fwd(params, q_in, kv_in)
    jax.block_until_ready(out)
    assert out.shape == (B, N, C)
    assert bool(jnp.all(jnp.isfinite(out)))
    print("KERNEL_OK")
</pallas_src>

<mosaic_0001>
module attributes {stable_mosaic.version = 11 : i64} {
  func.func @_fused_attn_kernel(%arg0: i32, %arg1: memref<2x8x32xf32, #tpu.memory_space<vmem>>, %arg2: memref<2x8x32xf32, #tpu.memory_space<vmem>>, %arg3: memref<32x32xbf16, #tpu.memory_space<vmem>>, %arg4: memref<1x32xf32, #tpu.memory_space<vmem>>, %arg5: memref<32x64xbf16, #tpu.memory_space<vmem>>, %arg6: memref<1x64xf32, #tpu.memory_space<vmem>>, %arg7: memref<4x2x8x8xbf16, #tpu.memory_space<vmem>>) attributes {dimension_semantics = [#tpu.dimension_semantics<parallel>], iteration_bounds = array<i64: 1>, scalar_prefetch = 0 : i64, scratch_operands = 0 : i64, tpu.core_type = #tpu.core_type<tc>, window_params = [{transform_indices = @transform_0, window_bounds = array<i64: 2, 8, 32>}, {transform_indices = @transform_1, window_bounds = array<i64: 2, 8, 32>}, {pipeline_mode = #tpu.pipeline_mode<synchronous>, transform_indices = @transform_2, window_bounds = array<i64: 32, 32>}, {pipeline_mode = #tpu.pipeline_mode<synchronous>, transform_indices = @transform_3, window_bounds = array<i64: 1, 32>}, {pipeline_mode = #tpu.pipeline_mode<synchronous>, transform_indices = @transform_4, window_bounds = array<i64: 32, 64>}, {pipeline_mode = #tpu.pipeline_mode<synchronous>, transform_indices = @transform_5, window_bounds = array<i64: 1, 64>}, {transform_indices = @transform_6, window_bounds = array<i64: 4, 2, 8, 8>}]} {
    %c0 = arith.constant 0 : index
    %c0_0 = arith.constant 0 : index
    %c0_1 = arith.constant 0 : index
    %0 = vector.load %arg1[%c0, %c0_0, %c0_1] : memref<2x8x32xf32, #tpu.memory_space<vmem>>, vector<2x8x32xf32>
    %1 = vector.shape_cast %0 : vector<2x8x32xf32> to vector<16x32xf32>
    %2 = arith.truncf %1 : vector<16x32xf32> to vector<16x32xbf16>
    %c0_2 = arith.constant 0 : index
    %c0_3 = arith.constant 0 : index
    %3 = vector.load %arg3[%c0_2, %c0_3] : memref<32x32xbf16, #tpu.memory_space<vmem>>, vector<32x32xbf16>
    %cst = arith.constant dense<0.000000e+00> : vector<16x32xf32>
    %4 = tpu.matmul %2, %3, %cst {dimension_numbers = #tpu.dot_dimension_numbers<[1], [0], [0], [1], [0, 0, 1, 1], [], []>} : vector<16x32xbf16>, vector<32x32xbf16>, vector<16x32xf32> -> vector<16x32xf32>
    %c0_4 = arith.constant 0 : index
    %c0_5 = arith.constant 0 : index
    %5 = vector.load %arg4[%c0_4, %c0_5] : memref<1x32xf32, #tpu.memory_space<vmem>>, vector<1x32xf32>
    %6 = vector.broadcast %5 : vector<1x32xf32> to vector<16x32xf32>
    %7 = arith.addf %4, %6 : vector<16x32xf32>
    %cst_6 = arith.constant 0.353553385 : f32
    %8 = vector.broadcast %cst_6 : f32 to vector<16x32xf32>
    %9 = arith.mulf %7, %8 : vector<16x32xf32>
    %10 = arith.truncf %9 : vector<16x32xf32> to vector<16x32xbf16>
    %c0_7 = arith.constant 0 : index
    %c0_8 = arith.constant 0 : index
    %c0_9 = arith.constant 0 : index
    %11 = vector.load %arg2[%c0_7, %c0_8, %c0_9] : memref<2x8x32xf32, #tpu.memory_space<vmem>>, vector<2x8x32xf32>
    %12 = vector.shape_cast %11 : vector<2x8x32xf32> to vector<16x32xf32>
    %13 = arith.truncf %12 : vector<16x32xf32> to vector<16x32xbf16>
    %c0_10 = arith.constant 0 : index
    %c0_11 = arith.constant 0 : index
    %14 = vector.load %arg5[%c0_10, %c0_11] : memref<32x64xbf16, #tpu.memory_space<vmem>>, vector<32x64xbf16>
    %cst_12 = arith.constant dense<0.000000e+00> : vector<16x64xf32>
    %15 = tpu.matmul %13, %14, %cst_12 {dimension_numbers = #tpu.dot_dimension_numbers<[1], [0], [0], [1], [0, 0, 1, 1], [], []>} : vector<16x32xbf16>, vector<32x64xbf16>, vector<16x64xf32> -> vector<16x64xf32>
    %c0_13 = arith.constant 0 : index
    %c0_14 = arith.constant 0 : index
    %16 = vector.load %arg6[%c0_13, %c0_14] : memref<1x64xf32, #tpu.memory_space<vmem>>, vector<1x64xf32>
    %17 = vector.broadcast %16 : vector<1x64xf32> to vector<16x64xf32>
    %18 = arith.addf %15, %17 : vector<16x64xf32>
    %19 = arith.truncf %18 : vector<16x64xf32> to vector<16x64xbf16>
    %20 = vector.extract_strided_slice %10 {offsets = [0, 0], sizes = [8, 32], strides = [1, 1]} : vector<16x32xbf16> to vector<8x32xbf16>
    %21 = vector.extract_strided_slice %19 {offsets = [0, 0], sizes = [8, 64], strides = [1, 1]} : vector<16x64xbf16> to vector<8x64xbf16>
    %22 = vector.extract_strided_slice %20 {offsets = [0, 0], sizes = [8, 8], strides = [1, 1]} : vector<8x32xbf16> to vector<8x8xbf16>
    %23 = vector.extract_strided_slice %21 {offsets = [0, 0], sizes = [8, 8], strides = [1, 1]} : vector<8x64xbf16> to vector<8x8xbf16>
    %24 = vector.extract_strided_slice %21 {offsets = [0, 32], sizes = [8, 8], strides = [1, 1]} : vector<8x64xbf16> to vector<8x8xbf16>
    %cst_15 = arith.constant dense<0.000000e+00> : vector<8x8xf32>
    %25 = tpu.matmul %22, %23, %cst_15 {dimension_numbers = #tpu.dot_dimension_numbers<[1], [1], [0], [0], [0, 0, 1, 0], [], []>} : vector<8x8xbf16>, vector<8x8xbf16>, vector<8x8xf32> -> vector<8x8xf32>
    %cst_16 = arith.constant dense<0xFF800000> : vector<8xf32>
    %26 = vector.multi_reduction <maximumf>, %25, %cst_16 [1] : vector<8x8xf32> to vector<8xf32>
    %27 = vector.shape_cast %26 : vector<8xf32> to vector<8x1xf32>
    %28 = vector.broadcast %27 : vector<8x1xf32> to vector<8x8xf32>
    %29 = arith.subf %25, %28 : vector<8x8xf32>
    %30 = math.exp %29 : vector<8x8xf32>
    %cst_17 = arith.constant dense<0.000000e+00> : vector<8xf32>
    %31 = vector.multi_reduction <add>, %30, %cst_17 [1] : vector<8x8xf32> to vector<8xf32>
    %32 = vector.shape_cast %31 : vector<8xf32> to vector<8x1xf32>
    %33 = arith.truncf %30 : vector<8x8xf32> to vector<8x8xbf16>
    %cst_18 = arith.constant dense<0.000000e+00> : vector<8x8xf32>
    %34 = tpu.matmul %33, %24, %cst_18 {dimension_numbers = #tpu.dot_dimension_numbers<[1], [0], [0], [1], [0, 0, 1, 1], [], []>} : vector<8x8xbf16>, vector<8x8xbf16>, vector<8x8xf32> -> vector<8x8xf32>
    %35 = tpu.reciprocal %32 {approx = true} : vector<8x1xf32> -> vector<8x1xf32>
    %36 = vector.broadcast %35 : vector<8x1xf32> to vector<8x8xf32>
    %37 = arith.mulf %34, %36 : vector<8x8xf32>
    %38 = arith.truncf %37 : vector<8x8xf32> to vector<8x8xbf16>
    %c0_19 = arith.constant 0 : index
    %c0_20 = arith.constant 0 : index
    %c0_21 = arith.constant 0 : index
    %c0_22 = arith.constant 0 : index
    %39 = vector.load %arg7[%c0_19, %c0_20, %c0_21, %c0_22] : memref<4x2x8x8xbf16, #tpu.memory_space<vmem>>, vector<1x1x8x8xbf16>
    %40 = vector.shape_cast %39 : vector<1x1x8x8xbf16> to vector<8x8xbf16>
    %41 = vector.shape_cast %38 : vector<8x8xbf16> to vector<1x1x8x8xbf16>
    tpu.vector_store %arg7[%c0_19, %c0_20, %c0_21, %c0_22], %41 {strides = array<i32>} : memref<4x2x8x8xbf16, #tpu.memory_space<vmem>>, vector<1x1x8x8xbf16>,
    %42 = vector.extract_strided_slice %20 {offsets = [0, 8], sizes = [8, 8], strides = [1, 1]} : vector<8x32xbf16> to vector<8x8xbf16>
    %43 = vector.extract_strided_slice %21 {offsets = [0, 8], sizes = [8, 8], strides = [1, 1]} : vector<8x64xbf16> to vector<8x8xbf16>
    %44 = vector.extract_strided_slice %21 {offsets = [0, 40], sizes = [8, 8], strides = [1, 1]} : vector<8x64xbf16> to vector<8x8xbf16>
    %cst_23 = arith.constant dense<0.000000e+00> : vector<8x8xf32>
    %45 = tpu.matmul %42, %43, %cst_23 {dimension_numbers = #tpu.dot_dimension_numbers<[1], [1], [0], [0], [0, 0, 1, 0], [], []>} : vector<8x8xbf16>, vector<8x8xbf16>, vector<8x8xf32> -> vector<8x8xf32>
    %cst_24 = arith.constant dense<0xFF800000> : vector<8xf32>
    %46 = vector.multi_reduction <maximumf>, %45, %cst_24 [1] : vector<8x8xf32> to vector<8xf32>
    %47 = vector.shape_cast %46 : vector<8xf32> to vector<8x1xf32>
    %48 = vector.broadcast %47 : vector<8x1xf32> to vector<8x8xf32>
    %49 = arith.subf %45, %48 : vector<8x8xf32>
    %50 = math.exp %49 : vector<8x8xf32>
    %cst_25 = arith.constant dense<0.000000e+00> : vector<8xf32>
    %51 = vector.multi_reduction <add>, %50, %cst_25 [1] : vector<8x8xf32> to vector<8xf32>
    %52 = vector.shape_cast %51 : vector<8xf32> to vector<8x1xf32>
    %53 = arith.truncf %50 : vector<8x8xf32> to vector<8x8xbf16>
    %cst_26 = arith.constant dense<0.000000e+00> : vector<8x8xf32>
    %54 = tpu.matmul %53, %44, %cst_26 {dimension_numbers = #tpu.dot_dimension_numbers<[1], [0], [0], [1], [0, 0, 1, 1], [], []>} : vector<8x8xbf16>, vector<8x8xbf16>, vector<8x8xf32> -> vector<8x8xf32>
    %55 = tpu.reciprocal %52 {approx = true} : vector<8x1xf32> -> vector<8x1xf32>
    %56 = vector.broadcast %55 : vector<8x1xf32> to vector<8x8xf32>
    %57 = arith.mulf %54, %56 : vector<8x8xf32>
    %58 = arith.truncf %57 : vector<8x8xf32> to vector<8x8xbf16>
    %c1 = arith.constant 1 : index
    %c0_27 = arith.constant 0 : index
    %c0_28 = arith.constant 0 : index
    %c0_29 = arith.constant 0 : index
    %59 = vector.load %arg7[%c1, %c0_27, %c0_28, %c0_29] : memref<4x2x8x8xbf16, #tpu.memory_space<vmem>>, vector<1x1x8x8xbf16>
    %60 = vector.shape_cast %59 : vector<1x1x8x8xbf16> to vector<8x8xbf16>
    %61 = vector.shape_cast %58 : vector<8x8xbf16> to vector<1x1x8x8xbf16>
    tpu.vector_store %arg7[%c1, %c0_27, %c0_28, %c0_29], %61 {strides = array<i32>} : memref<4x2x8x8xbf16, #tpu.memory_space<vmem>>, vector<1x1x8x8xbf16>,
    %62 = vector.extract_strided_slice %20 {offsets = [0, 16], sizes = [8, 8], strides = [1, 1]} : vector<8x32xbf16> to vector<8x8xbf16>
    %63 = vector.extract_strided_slice %21 {offsets = [0, 16], sizes = [8, 8], strides = [1, 1]} : vector<8x64xbf16> to vector<8x8xbf16>
    %64 = vector.extract_strided_slice %21 {offsets = [0, 48], sizes = [8, 8], strides = [1, 1]} : vector<8x64xbf16> to vector<8x8xbf16>
    %cst_30 = arith.constant dense<0.000000e+00> : vector<8x8xf32>
    %65 = tpu.matmul %62, %63, %cst_30 {dimension_numbers = #tpu.dot_dimension_numbers<[1], [1], [0], [0], [0, 0, 1, 0], [], []>} : vector<8x8xbf16>, vector<8x8xbf16>, vector<8x8xf32> -> vector<8x8xf32>
    %cst_31 = arith.constant dense<0xFF800000> : vector<8xf32>
    %66 = vector.multi_reduction <maximumf>, %65, %cst_31 [1] : vector<8x8xf32> to vector<8xf32>
    %67 = vector.shape_cast %66 : vector<8xf32> to vector<8x1xf32>
    %68 = vector.broadcast %67 : vector<8x1xf32> to vector<8x8xf32>
    %69 = arith.subf %65, %68 : vector<8x8xf32>
    %70 = math.exp %69 : vector<8x8xf32>
    %cst_32 = arith.constant dense<0.000000e+00> : vector<8xf32>
    %71 = vector.multi_reduction <add>, %70, %cst_32 [1] : vector<8x8xf32> to vector<8xf32>
    %72 = vector.shape_cast %71 : vector<8xf32> to vector<8x1xf32>
    %73 = arith.truncf %70 : vector<8x8xf32> to vector<8x8xbf16>
    %cst_33 = arith.constant dense<0.000000e+00> : vector<8x8xf32>
    %74 = tpu.matmul %73, %64, %cst_33 {dimension_numbers = #tpu.dot_dimension_numbers<[1], [0], [0], [1], [0, 0, 1, 1], [], []>} : vector<8x8xbf16>, vector<8x8xbf16>, vector<8x8xf32> -> vector<8x8xf32>
    %75 = tpu.reciprocal %72 {approx = true} : vector<8x1xf32> -> vector<8x1xf32>
    %76 = vector.broadcast %75 : vector<8x1xf32> to vector<8x8xf32>
    %77 = arith.mulf %74, %76 : vector<8x8xf32>
    %78 = arith.truncf %77 : vector<8x8xf32> to vector<8x8xbf16>
    %c2 = arith.constant 2 : index
    %c0_34 = arith.constant 0 : index
    %c0_35 = arith.constant 0 : index
    %c0_36 = arith.constant 0 : index
    %79 = vector.load %arg7[%c2, %c0_34, %c0_35, %c0_36] : memref<4x2x8x8xbf16, #tpu.memory_space<vmem>>, vector<1x1x8x8xbf16>
    %80 = vector.shape_cast %79 : vector<1x1x8x8xbf16> to vector<8x8xbf16>
    %81 = vector.shape_cast %78 : vector<8x8xbf16> to vector<1x1x8x8xbf16>
    tpu.vector_store %arg7[%c2, %c0_34, %c0_35, %c0_36], %81 {strides = array<i32>} : memref<4x2x8x8xbf16, #tpu.memory_space<vmem>>, vector<1x1x8x8xbf16>,
    %82 = vector.extract_strided_slice %20 {offsets = [0, 24], sizes = [8, 8], strides = [1, 1]} : vector<8x32xbf16> to vector<8x8xbf16>
    %83 = vector.extract_strided_slice %21 {offsets = [0, 24], sizes = [8, 8], strides = [1, 1]} : vector<8x64xbf16> to vector<8x8xbf16>
    %84 = vector.extract_strided_slice %21 {offsets = [0, 56], sizes = [8, 8], strides = [1, 1]} : vector<8x64xbf16> to vector<8x8xbf16>
    %cst_37 = arith.constant dense<0.000000e+00> : vector<8x8xf32>
    %85 = tpu.matmul %82, %83, %cst_37 {dimension_numbers = #tpu.dot_dimension_numbers<[1], [1], [0], [0], [0, 0, 1, 0], [], []>} : vector<8x8xbf16>, vector<8x8xbf16>, vector<8x8xf32> -> vector<8x8xf32>
    %cst_38 = arith.constant dense<0xFF800000> : vector<8xf32>
    %86 = vector.multi_reduction <maximumf>, %85, %cst_38 [1] : vector<8x8xf32> to vector<8xf32>
    %87 = vector.shape_cast %86 : vector<8xf32> to vector<8x1xf32>
    %88 = vector.broadcast %87 : vector<8x1xf32> to vector<8x8xf32>
    %89 = arith.subf %85, %88 : vector<8x8xf32>
    %90 = math.exp %89 : vector<8x8xf32>
    %cst_39 = arith.constant dense<0.000000e+00> : vector<8xf32>
    %91 = vector.multi_reduction <add>, %90, %cst_39 [1] : vector<8x8xf32> to vector<8xf32>
    %92 = vector.shape_cast %91 : vector<8xf32> to vector<8x1xf32>
    %93 = arith.truncf %90 : vector<8x8xf32> to vector<8x8xbf16>
    %cst_40 = arith.constant dense<0.000000e+00> : vector<8x8xf32>
    %94 = tpu.matmul %93, %84, %cst_40 {dimension_numbers = #tpu.dot_dimension_numbers<[1], [0], [0], [1], [0, 0, 1, 1], [], []>} : vector<8x8xbf16>, vector<8x8xbf16>, vector<8x8xf32> -> vector<8x8xf32>
    %95 = tpu.reciprocal %92 {approx = true} : vector<8x1xf32> -> vector<8x1xf32>
    %96 = vector.broadcast %95 : vector<8x1xf32> to vector<8x8xf32>
    %97 = arith.mulf %94, %96 : vector<8x8xf32>
    %98 = arith.truncf %97 : vector<8x8xf32> to vector<8x8xbf16>
    %c3 = arith.constant 3 : index
    %c0_41 = arith.constant 0 : index
    %c0_42 = arith.constant 0 : index
    %c0_43 = arith.constant 0 : index
    %99 = vector.load %arg7[%c3, %c0_41, %c0_42, %c0_43] : memref<4x2x8x8xbf16, #tpu.memory_space<vmem>>, vector<1x1x8x8xbf16>
    %100 = vector.shape_cast %99 : vector<1x1x8x8xbf16> to vector<8x8xbf16>
    %101 = vector.shape_cast %98 : vector<8x8xbf16> to vector<1x1x8x8xbf16>
    tpu.vector_store %arg7[%c3, %c0_41, %c0_42, %c0_43], %101 {strides = array<i32>} : memref<4x2x8x8xbf16, #tpu.memory_space<vmem>>, vector<1x1x8x8xbf16>,
    %102 = vector.extract_strided_slice %10 {offsets = [8, 0], sizes = [8, 32], strides = [1, 1]} : vector<16x32xbf16> to vector<8x32xbf16>
    %103 = vector.extract_strided_slice %19 {offsets = [8, 0], sizes = [8, 64], strides = [1, 1]} : vector<16x64xbf16> to vector<8x64xbf16>
    %104 = vector.extract_strided_slice %102 {offsets = [0, 0], sizes = [8, 8], strides = [1, 1]} : vector<8x32xbf16> to vector<8x8xbf16>
    %105 = vector.extract_strided_slice %103 {offsets = [0, 0], sizes = [8, 8], strides = [1, 1]} : vector<8x64xbf16> to vector<8x8xbf16>
    %106 = vector.extract_strided_slice %103 {offsets = [0, 32], sizes = [8, 8], strides = [1, 1]} : vector<8x64xbf16> to vector<8x8xbf16>
    %cst_44 = arith.constant dense<0.000000e+00> : vector<8x8xf32>
    %107 = tpu.matmul %104, %105, %cst_44 {dimension_numbers = #tpu.dot_dimension_numbers<[1], [1], [0], [0], [0, 0, 1, 0], [], []>} : vector<8x8xbf16>, vector<8x8xbf16>, vector<8x8xf32> -> vector<8x8xf32>
    %cst_45 = arith.constant dense<0xFF800000> : vector<8xf32>
    %108 = vector.multi_reduction <maximumf>, %107, %cst_45 [1] : vector<8x8xf32> to vector<8xf32>
    %109 = vector.shape_cast %108 : vector<8xf32> to vector<8x1xf32>
    %110 = vector.broadcast %109 : vector<8x1xf32> to vector<8x8xf32>
    %111 = arith.subf %107, %110 : vector<8x8xf32>
    %112 = math.exp %111 : vector<8x8xf32>
    %cst_46 = arith.constant dense<0.000000e+00> : vector<8xf32>
    %113 = vector.multi_reduction <add>, %112, %cst_46 [1] : vector<8x8xf32> to vector<8xf32>
    %114 = vector.shape_cast %113 : vector<8xf32> to vector<8x1xf32>
    %115 = arith.truncf %112 : vector<8x8xf32> to vector<8x8xbf16>
    %cst_47 = arith.constant dense<0.000000e+00> : vector<8x8xf32>
    %116 = tpu.matmul %115, %106, %cst_47 {dimension_numbers = #tpu.dot_dimension_numbers<[1], [0], [0], [1], [0, 0, 1, 1], [], []>} : vector<8x8xbf16>, vector<8x8xbf16>, vector<8x8xf32> -> vector<8x8xf32>
    %117 = tpu.reciprocal %114 {approx = true} : vector<8x1xf32> -> vector<8x1xf32>
    %118 = vector.broadcast %117 : vector<8x1xf32> to vector<8x8xf32>
    %119 = arith.mulf %116, %118 : vector<8x8xf32>
    %120 = arith.truncf %119 : vector<8x8xf32> to vector<8x8xbf16>
    %c0_48 = arith.constant 0 : index
    %c1_49 = arith.constant 1 : index
    %c0_50 = arith.constant 0 : index
    %c0_51 = arith.constant 0 : index
    %121 = vector.load %arg7[%c0_48, %c1_49, %c0_50, %c0_51] : memref<4x2x8x8xbf16, #tpu.memory_space<vmem>>, vector<1x1x8x8xbf16>
    %122 = vector.shape_cast %121 : vector<1x1x8x8xbf16> to vector<8x8xbf16>
    %123 = vector.shape_cast %120 : vector<8x8xbf16> to vector<1x1x8x8xbf16>
    tpu.vector_store %arg7[%c0_48, %c1_49, %c0_50, %c0_51], %123 {strides = array<i32>} : memref<4x2x8x8xbf16, #tpu.memory_space<vmem>>, vector<1x1x8x8xbf16>,
    %124 = vector.extract_strided_slice %102 {offsets = [0, 8], sizes = [8, 8], strides = [1, 1]} : vector<8x32xbf16> to vector<8x8xbf16>
    %125 = vector.extract_strided_slice %103 {offsets = [0, 8], sizes = [8, 8], strides = [1, 1]} : vector<8x64xbf16> to vector<8x8xbf16>
    %126 = vector.extract_strided_slice %103 {offsets = [0, 40], sizes = [8, 8], strides = [1, 1]} : vector<8x64xbf16> to vector<8x8xbf16>
    %cst_52 = arith.constant dense<0.000000e+00> : vector<8x8xf32>
    %127 = tpu.matmul %124, %125, %cst_52 {dimension_numbers = #tpu.dot_dimension_numbers<[1], [1], [0], [0], [0, 0, 1, 0], [], []>} : vector<8x8xbf16>, vector<8x8xbf16>, vector<8x8xf32> -> vector<8x8xf32>
    %cst_53 = arith.constant dense<0xFF800000> : vector<8xf32>
    %128 = vector.multi_reduction <maximumf>, %127, %cst_53 [1] : vector<8x8xf32> to vector<8xf32>
    %129 = vector.shape_cast %128 : vector<8xf32> to vector<8x1xf32>
    %130 = vector.broadcast %129 : vector<8x1xf32> to vector<8x8xf32>
    %131 = arith.subf %127, %130 : vector<8x8xf32>
    %132 = math.exp %131 : vector<8x8xf32>
    %cst_54 = arith.constant dense<0.000000e+00> : vector<8xf32>
    %133 = vector.multi_reduction <add>, %132, %cst_54 [1] : vector<8x8xf32> to vector<8xf32>
    %134 = vector.shape_cast %133 : vector<8xf32> to vector<8x1xf32>
    %135 = arith.truncf %132 : vector<8x8xf32> to vector<8x8xbf16>
    %cst_55 = arith.constant dense<0.000000e+00> : vector<8x8xf32>
    %136 = tpu.matmul %135, %126, %cst_55 {dimension_numbers = #tpu.dot_dimension_numbers<[1], [0], [0], [1], [0, 0, 1, 1], [], []>} : vector<8x8xbf16>, vector<8x8xbf16>, vector<8x8xf32> -> vector<8x8xf32>
    %137 = tpu.reciprocal %134 {approx = true} : vector<8x1xf32> -> vector<8x1xf32>
    %138 = vector.broadcast %137 : vector<8x1xf32> to vector<8x8xf32>
    %139 = arith.mulf %136, %138 : vector<8x8xf32>
    %140 = arith.truncf %139 : vector<8x8xf32> to vector<8x8xbf16>
    %c1_56 = arith.constant 1 : index
    %c1_57 = arith.constant 1 : index
    %c0_58 = arith.constant 0 : index
    %c0_59 = arith.constant 0 : index
    %141 = vector.load %arg7[%c1_56, %c1_57, %c0_58, %c0_59] : memref<4x2x8x8xbf16, #tpu.memory_space<vmem>>, vector<1x1x8x8xbf16>
    %142 = vector.shape_cast %141 : vector<1x1x8x8xbf16> to vector<8x8xbf16>
    %143 = vector.shape_cast %140 : vector<8x8xbf16> to vector<1x1x8x8xbf16>
    tpu.vector_store %arg7[%c1_56, %c1_57, %c0_58, %c0_59], %143 {strides = array<i32>} : memref<4x2x8x8xbf16, #tpu.memory_space<vmem>>, vector<1x1x8x8xbf16>,
    %144 = vector.extract_strided_slice %102 {offsets = [0, 16], sizes = [8, 8], strides = [1, 1]} : vector<8x32xbf16> to vector<8x8xbf16>
    %145 = vector.extract_strided_slice %103 {offsets = [0, 16], sizes = [8, 8], strides = [1, 1]} : vector<8x64xbf16> to vector<8x8xbf16>
    %146 = vector.extract_strided_slice %103 {offsets = [0, 48], sizes = [8, 8], strides = [1, 1]} : vector<8x64xbf16> to vector<8x8xbf16>
    %cst_60 = arith.constant dense<0.000000e+00> : vector<8x8xf32>
    %147 = tpu.matmul %144, %145, %cst_60 {dimension_numbers = #tpu.dot_dimension_numbers<[1], [1], [0], [0], [0, 0, 1, 0], [], []>} : vector<8x8xbf16>, vector<8x8xbf16>, vector<8x8xf32> -> vector<8x8xf32>
    %cst_61 = arith.constant dense<0xFF800000> : vector<8xf32>
    %148 = vector.multi_reduction <maximumf>, %147, %cst_61 [1] : vector<8x8xf32> to vector<8xf32>
    %149 = vector.shape_cast %148 : vector<8xf32> to vector<8x1xf32>
    %150 = vector.broadcast %149 : vector<8x1xf32> to vector<8x8xf32>
    %151 = arith.subf %147, %150 : vector<8x8xf32>
    %152 = math.exp %151 : vector<8x8xf32>
    %cst_62 = arith.constant dense<0.000000e+00> : vector<8xf32>
    %153 = vector.multi_reduction <add>, %152, %cst_62 [1] : vector<8x8xf32> to vector<8xf32>
    %154 = vector.shape_cast %153 : vector<8xf32> to vector<8x1xf32>
    %155 = arith.truncf %152 : vector<8x8xf32> to vector<8x8xbf16>
    %cst_63 = arith.constant dense<0.000000e+00> : vector<8x8xf32>
    %156 = tpu.matmul %155, %146, %cst_63 {dimension_numbers = #tpu.dot_dimension_numbers<[1], [0], [0], [1], [0, 0, 1, 1], [], []>} : vector<8x8xbf16>, vector<8x8xbf16>, vector<8x8xf32> -> vector<8x8xf32>
    %157 = tpu.reciprocal %154 {approx = true} : vector<8x1xf32> -> vector<8x1xf32>
    %158 = vector.broadcast %157 : vector<8x1xf32> to vector<8x8xf32>
    %159 = arith.mulf %156, %158 : vector<8x8xf32>
    %160 = arith.truncf %159 : vector<8x8xf32> to vector<8x8xbf16>
    %c2_64 = arith.constant 2 : index
    %c1_65 = arith.constant 1 : index
    %c0_66 = arith.constant 0 : index
    %c0_67 = arith.constant 0 : index
    %161 = vector.load %arg7[%c2_64, %c1_65, %c0_66, %c0_67] : memref<4x2x8x8xbf16, #tpu.memory_space<vmem>>, vector<1x1x8x8xbf16>
    %162 = vector.shape_cast %161 : vector<1x1x8x8xbf16> to vector<8x8xbf16>
    %163 = vector.shape_cast %160 : vector<8x8xbf16> to vector<1x1x8x8xbf16>
    tpu.vector_store %arg7[%c2_64, %c1_65, %c0_66, %c0_67], %163 {strides = array<i32>} : memref<4x2x8x8xbf16, #tpu.memory_space<vmem>>, vector<1x1x8x8xbf16>,
    %164 = vector.extract_strided_slice %102 {offsets = [0, 24], sizes = [8, 8], strides = [1, 1]} : vector<8x32xbf16> to vector<8x8xbf16>
    %165 = vector.extract_strided_slice %103 {offsets = [0, 24], sizes = [8, 8], strides = [1, 1]} : vector<8x64xbf16> to vector<8x8xbf16>
    %166 = vector.extract_strided_slice %103 {offsets = [0, 56], sizes = [8, 8], strides = [1, 1]} : vector<8x64xbf16> to vector<8x8xbf16>
    %cst_68 = arith.constant dense<0.000000e+00> : vector<8x8xf32>
    %167 = tpu.matmul %164, %165, %cst_68 {dimension_numbers = #tpu.dot_dimension_numbers<[1], [1], [0], [0], [0, 0, 1, 0], [], []>} : vector<8x8xbf16>, vector<8x8xbf16>, vector<8x8xf32> -> vector<8x8xf32>
    %cst_69 = arith.constant dense<0xFF800000> : vector<8xf32>
    %168 = vector.multi_reduction <maximumf>, %167, %cst_69 [1] : vector<8x8xf32> to vector<8xf32>
    %169 = vector.shape_cast %168 : vector<8xf32> to vector<8x1xf32>
    %170 = vector.broadcast %169 : vector<8x1xf32> to vector<8x8xf32>
    %171 = arith.subf %167, %170 : vector<8x8xf32>
    %172 = math.exp %171 : vector<8x8xf32>
    %cst_70 = arith.constant dense<0.000000e+00> : vector<8xf32>
    %173 = vector.multi_reduction <add>, %172, %cst_70 [1] : vector<8x8xf32> to vector<8xf32>
    %174 = vector.shape_cast %173 : vector<8xf32> to vector<8x1xf32>
    %175 = arith.truncf %172 : vector<8x8xf32> to vector<8x8xbf16>
    %cst_71 = arith.constant dense<0.000000e+00> : vector<8x8xf32>
    %176 = tpu.matmul %175, %166, %cst_71 {dimension_numbers = #tpu.dot_dimension_numbers<[1], [0], [0], [1], [0, 0, 1, 1], [], []>} : vector<8x8xbf16>, vector<8x8xbf16>, vector<8x8xf32> -> vector<8x8xf32>
    %177 = tpu.reciprocal %174 {approx = true} : vector<8x1xf32> -> vector<8x1xf32>
    %178 = vector.broadcast %177 : vector<8x1xf32> to vector<8x8xf32>
    %179 = arith.mulf %176, %178 : vector<8x8xf32>
    %180 = arith.truncf %179 : vector<8x8xf32> to vector<8x8xbf16>
    %c3_72 = arith.constant 3 : index
    %c1_73 = arith.constant 1 : index
    %c0_74 = arith.constant 0 : index
    %c0_75 = arith.constant 0 : index
    %181 = vector.load %arg7[%c3_72, %c1_73, %c0_74, %c0_75] : memref<4x2x8x8xbf16, #tpu.memory_space<vmem>>, vector<1x1x8x8xbf16>
    %182 = vector.shape_cast %181 : vector<1x1x8x8xbf16> to vector<8x8xbf16>
    %183 = vector.shape_cast %180 : vector<8x8xbf16> to vector<1x1x8x8xbf16>
    tpu.vector_store %arg7[%c3_72, %c1_73, %c0_74, %c0_75], %183 {strides = array<i32>} : memref<4x2x8x8xbf16, #tpu.memory_space<vmem>>, vector<1x1x8x8xbf16>,
    return
  }
  func.func @transform_0(%arg0: i32) -> (i32, i32, i32) {
    %c0_i32 = arith.constant 0 : i32
    %c0_i32_0 = arith.constant 0 : i32
    %c0_i32_1 = arith.constant 0 : i32
    return %arg0, %c0_i32, %c0_i32_0 : i32, i32, i32
  }
  func.func @transform_1(%arg0: i32) -> (i32, i32, i32) {
    %c0_i32 = arith.constant 0 : i32
    %c0_i32_0 = arith.constant 0 : i32
    %c0_i32_1 = arith.constant 0 : i32
    return %arg0, %c0_i32, %c0_i32_0 : i32, i32, i32
  }
  func.func @transform_2(%arg0: i32) -> (i32, i32) {
    %c0_i32 = arith.constant 0 : i32
    %c0_i32_0 = arith.constant 0 : i32
    %c0_i32_1 = arith.constant 0 : i32
    return %c0_i32, %c0_i32_0 : i32, i32
  }
  func.func @transform_3(%arg0: i32) -> (i32, i32) {
    %c0_i32 = arith.constant 0 : i32
    %c0_i32_0 = arith.constant 0 : i32
    %c0_i32_1 = arith.constant 0 : i32
    return %c0_i32, %c0_i32_0 : i32, i32
  }
  func.func @transform_4(%arg0: i32) -> (i32, i32) {
    %c0_i32 = arith.constant 0 : i32
    %c0_i32_0 = arith.constant 0 : i32
    %c0_i32_1 = arith.constant 0 : i32
    return %c0_i32, %c0_i32_0 : i32, i32
  }
  func.func @transform_5(%arg0: i32) -> (i32, i32) {
    %c0_i32 = arith.constant 0 : i32
    %c0_i32_0 = arith.constant 0 : i32
    %c0_i32_1 = arith.constant 0 : i32
    return %c0_i32, %c0_i32_0 : i32, i32
  }
  func.func @transform_6(%arg0: i32) -> (i32, i32, i32, i32) {
    %c0_i32 = arith.constant 0 : i32
    %c0_i32_0 = arith.constant 0 : i32
    %c0_i32_1 = arith.constant 0 : i32
    %c0_i32_2 = arith.constant 0 : i32
    return %c0_i32, %arg0, %c0_i32_0, %c0_i32_1 : i32, i32, i32, i32
  }
}

module attributes {stable_mosaic.version = 11 : i64} {
  func.func @_proj_ln_kernel(%arg0: i32, %arg1: memref<16x32xbf16, #tpu.memory_space<vmem>>, %arg2: memref<32x32xbf16, #tpu.memory_space<vmem>>, %arg3: memref<1x32xf32, #tpu.memory_space<vmem>>, %arg4: memref<1x32xf32, #tpu.memory_space<vmem>>, %arg5: memref<1x32xf32, #tpu.memory_space<vmem>>, %arg6: memref<16x32xf32, #tpu.memory_space<vmem>>) attributes {dimension_semantics = [#tpu.dimension_semantics<parallel>], iteration_bounds = array<i64: 1>, scalar_prefetch = 0 : i64, scratch_operands = 0 : i64, tpu.core_type = #tpu.core_type<tc>, window_params = [{transform_indices = @transform_0, window_bounds = array<i64: 16, 32>}, {pipeline_mode = #tpu.pipeline_mode<synchronous>, transform_indices = @transform_1, window_bounds = array<i64: 32, 32>}, {pipeline_mode = #tpu.pipeline_mode<synchronous>, transform_indices = @transform_2, window_bounds = array<i64: 1, 32>}, {pipeline_mode = #tpu.pipeline_mode<synchronous>, transform_indices = @transform_3, window_bounds = array<i64: 1, 32>}, {pipeline_mode = #tpu.pipeline_mode<synchronous>, transform_indices = @transform_4, window_bounds = array<i64: 1, 32>}, {transform_indices = @transform_5, window_bounds = array<i64: 16, 32>}]} {
    %c0 = arith.constant 0 : index
    %c0_0 = arith.constant 0 : index
    %0 = vector.load %arg1[%c0, %c0_0] : memref<16x32xbf16, #tpu.memory_space<vmem>>, vector<16x32xbf16>
    %c0_1 = arith.constant 0 : index
    %c0_2 = arith.constant 0 : index
    %1 = vector.load %arg2[%c0_1, %c0_2] : memref<32x32xbf16, #tpu.memory_space<vmem>>, vector<32x32xbf16>
    %cst = arith.constant dense<0.000000e+00> : vector<16x32xf32>
    %2 = tpu.matmul %0, %1, %cst {dimension_numbers = #tpu.dot_dimension_numbers<[1], [0], [0], [1], [0, 0, 1, 1], [], []>} : vector<16x32xbf16>, vector<32x32xbf16>, vector<16x32xf32> -> vector<16x32xf32>
    %c0_3 = arith.constant 0 : index
    %c0_4 = arith.constant 0 : index
    %3 = vector.load %arg3[%c0_3, %c0_4] : memref<1x32xf32, #tpu.memory_space<vmem>>, vector<1x32xf32>
    %4 = vector.broadcast %3 : vector<1x32xf32> to vector<16x32xf32>
    %5 = arith.addf %2, %4 : vector<16x32xf32>
    %cst_5 = arith.constant dense<0.000000e+00> : vector<16xf32>
    %6 = vector.multi_reduction <add>, %5, %cst_5 [1] : vector<16x32xf32> to vector<16xf32>
    %7 = vector.shape_cast %6 : vector<16xf32> to vector<16x1xf32>
    %cst_6 = arith.constant 3.200000e+01 : f32
    %8 = vector.broadcast %cst_6 : f32 to vector<16x1xf32>
    %9 = arith.divf %7, %8 : vector<16x1xf32>
    %10 = vector.broadcast %9 : vector<16x1xf32> to vector<16x32xf32>
    %11 = arith.subf %5, %10 : vector<16x32xf32>
    %12 = arith.mulf %11, %11 : vector<16x32xf32>
    %cst_7 = arith.constant dense<0.000000e+00> : vector<16xf32>
    %13 = vector.multi_reduction <add>, %12, %cst_7 [1] : vector<16x32xf32> to vector<16xf32>
    %14 = vector.shape_cast %13 : vector<16xf32> to vector<16x1xf32>
    %cst_8 = arith.constant 3.200000e+01 : f32
    %15 = vector.broadcast %cst_8 : f32 to vector<16x1xf32>
    %16 = arith.divf %14, %15 : vector<16x1xf32>
    %17 = vector.broadcast %9 : vector<16x1xf32> to vector<16x32xf32>
    %18 = arith.subf %5, %17 : vector<16x32xf32>
    %cst_9 = arith.constant 9.99999974E-6 : f32
    %19 = vector.broadcast %cst_9 : f32 to vector<16x1xf32>
    %20 = arith.addf %16, %19 : vector<16x1xf32>
    %21 = math.rsqrt %20 : vector<16x1xf32>
    %22 = vector.broadcast %21 : vector<16x1xf32> to vector<16x32xf32>
    %23 = arith.mulf %18, %22 : vector<16x32xf32>
    %c0_10 = arith.constant 0 : index
    %c0_11 = arith.constant 0 : index
    %24 = vector.load %arg4[%c0_10, %c0_11] : memref<1x32xf32, #tpu.memory_space<vmem>>, vector<1x32xf32>
    %25 = vector.broadcast %24 : vector<1x32xf32> to vector<16x32xf32>
    %26 = arith.mulf %23, %25 : vector<16x32xf32>
    %c0_12 = arith.constant 0 : index
    %c0_13 = arith.constant 0 : index
    %27 = vector.load %arg5[%c0_12, %c0_13] : memref<1x32xf32, #tpu.memory_space<vmem>>, vector<1x32xf32>
    %28 = vector.broadcast %27 : vector<1x32xf32> to vector<16x32xf32>
    %29 = arith.addf %26, %28 : vector<16x32xf32>
    %c0_14 = arith.constant 0 : index
    %c0_15 = arith.constant 0 : index
    %30 = vector.load %arg6[%c0_14, %c0_15] : memref<16x32xf32, #tpu.memory_space<vmem>>, vector<16x32xf32>
    tpu.vector_store %arg6[%c0_14, %c0_15], %29 {strides = array<i32>} : memref<16x32xf32, #tpu.memory_space<vmem>>, vector<16x32xf32>,
    return
  }
  func.func @transform_0(%arg0: i32) -> (i32, i32) {
    %c0_i32 = arith.constant 0 : i32
    %c0_i32_0 = arith.constant 0 : i32
    return %arg0, %c0_i32 : i32, i32
  }
  func.func @transform_1(%arg0: i32) -> (i32, i32) {
    %c0_i32 = arith.constant 0 : i32
    %c0_i32_0 = arith.constant 0 : i32
    %c0_i32_1 = arith.constant 0 : i32
    return %c0_i32, %c0_i32_0 : i32, i32
  }
  func.func @transform_2(%arg0: i32) -> (i32, i32) {
    %c0_i32 = arith.constant 0 : i32
    %c0_i32_0 = arith.constant 0 : i32
    %c0_i32_1 = arith.constant 0 : i32
    return %c0_i32, %c0_i32_0 : i32, i32
  }
  func.func @transform_3(%arg0: i32) -> (i32, i32) {
    %c0_i32 = arith.constant 0 : i32
    %c0_i32_0 = arith.constant 0 : i32
    %c0_i32_1 = arith.constant 0 : i32
    return %c0_i32, %c0_i32_0 : i32, i32
  }
  func.func @transform_4(%arg0: i32) -> (i32, i32) {
    %c0_i32 = arith.constant 0 : i32
    %c0_i32_0 = arith.constant 0 : i32
    %c0_i32_1 = arith.constant 0 : i32
    return %c0_i32, %c0_i32_0 : i32, i32
  }
  func.func @transform_5(%arg0: i32) -> (i32, i32) {
    %c0_i32 = arith.constant 0 : i32
    %c0_i32_0 = arith.constant 0 : i32
    return %arg0, %c0_i32 : i32, i32
  }
}

</mosaic_0001>

<bundles_post_ra>
// kernel: attention_via_tasks_forward.3
= control target key start
LH: loop header
LB: loop body
LE: loop exit
PB: predicated region body
PF: predicated region fallthrough
CT: control target
= control target key end

     0   :  { %v214_v1 = vmov 0.0   ;;  %vm215_vm0 = vmmov 0   ;;  %s286_s0 = inlined_call_operand.vmem [shape: bf16[16,32], index: 0, kind: input, shape index: {}]   ;;  %s287_s1 = inlined_call_operand.vmem [shape: bf16[32,32], index: 1, kind: input, shape index: {}]   ;;  %s288_s2 = inlined_call_operand.vmem [shape: f32[1,32], index: 2, kind: input, shape index: {}]   ;;  %s289_s3 = inlined_call_operand.vmem [shape: f32[1,32], index: 3, kind: input, shape index: {}]   ;;  %s290_s4 = inlined_call_operand.vmem [shape: f32[1,32], index: 4, kind: input, shape index: {}]   ;;  %s291_s5 = inlined_call_operand.hbm [shape: f32[16,32], index: 5, kind: output, shape index: {}]  }
   0x1   :  { %v183_v0 = vld [vmem:[%s287_s1] sm:$0xff]   ;;  %170 = vmatprep.subr.bf16.mxu0 %v214_v1  ;;  %v184_v2 = vld [vmem:[%s287_s1 + $0x8] sm:$0xff]   ;;  %174 = vmatprep.mubr.msk.bf16.mxu0 %vm215_vm0, %v214_v1 }
   0x2   :  { %171 = vmatpush3.bf16.msra.mxu0 %v183_v0 }
   0x3   :  { %172 = vmatprep.subr.bf16.mxu0 %v214_v1 }
   0x4   :  { %10 = vsyncpa [#allocation3], 0  ;;  %v185_v3 = vld [vmem:[%s286_s0] sm:$0xff]   ;;  %vm52_vm1 = vcmask 261120   ;;  %s216_s27 = smov [#allocation2]  }
   0x5   :  { %v160_v4 = vld [vmem:[%s288_s2] ss:$0 sm:$0xff]  ;;  %s149_s28 = sshll.u32 %s216_s27, 4  ;;  %s150_s28 = int_to_ptr.vmem [resolvable:$true] %s149_s28 }
   0x6   :  { %173 = vmatpush3.bf16.msra.mxu0 %v184_v2  ;;  %v165_v30 = vld [vmem:[%s289_s3] ss:$0 sm:$0xff]  ;;  %s190_s29 = scalar_lea.vmem %s150_s28, 256  ;;  %p195_p1 = scmp.lt.s32.totalorder %s150_s28, %s150_s28 }
   0x7   :  { %v166_v32 = vld [vmem:[%s290_s4] ss:$0 sm:$0xff]  ;;  %p191_p0 = scmp.ne.s32.totalorder %s150_s28, %s190_s29  ;;  %p196_p2 = scmp.lt.s32.totalorder %s190_s29, %s190_s29 }
   0x9   :  { %175 = vmatmul.mubr.msk.bf16.vlgmr.msra.gmra.mrb[0].mxu0 %vm52_vm1, %v185_v3  ;;  %p197_p3 = por %p196_p2, %p195_p1 }
   0xb   :  { %p198_p4 = pnand %p197_p3, %p191_p0 }
  0xdc   :  { %v90_v5 = vpop.f32.mrb[0].mxu0 }
  0xdd   :  { %v91_v6 = vadd.f32 %v160_v4, %v90_v5  ;;  %v176_v7 = vpop.f32.mrb[1].mxu0 }
  0xde   :  { %v93_v8 = vpop.f32.mrb[2].mxu0 }
  0xdf   :  { %v94_v9 = vadd.f32 %v160_v4, %v93_v8  ;;  %v177_v10 = vpop.f32.mrb[3].mxu0  ;;  %v97_v11 = vsel %vm52_vm1, %v91_v6, 0.0 }
  0xe0   :  { %98 = vadd.xlane.f32.xlu0 %v97_v11 }
  0xe1   :  { %v100_v12 = vsel %vm52_vm1, %v94_v9, 0.0 }
  0xe4   :  { %101 = vadd.xlane.f32.xlu0 %v100_v12 }
 0x16d   :  { %v99_v13 = vpop.xlane.xlu0 %98 }
 0x16e   :  { %v104_v14 = vmul.f32 0.03125, %v99_v13 }
 0x170   :  { %v106_v15 = vsub.f32 %v91_v6, %v104_v14 }
 0x171   :  { %v102_v16 = vpop.xlane.xlu0 %101 }
 0x172   :  { %v105_v17 = vmul.f32 0.03125, %v102_v16  ;;  %v108_v18 = vmul.f32 %v106_v15, %v106_v15 }
 0x174   :  { %v107_v19 = vsub.f32 %v94_v9, %v105_v17  ;;  %v110_v20 = vsel %vm52_vm1, %v108_v18, 0.0 }
 0x175   :  { %111 = vadd.xlane.f32.xlu1 %v110_v20 }
 0x176   :  { %v109_v21 = vmul.f32 %v107_v19, %v107_v19 }
 0x178   :  { %v113_v22 = vsel %vm52_vm1, %v109_v21, 0.0 }
 0x179   :  { %114 = vadd.xlane.f32.xlu1 %v113_v22 }
 0x202   :  { %v112_v23 = vpop.xlane.xlu1 %111 }
 0x203   :  { %v116_v24 = vmul.f32 0.03125, %v112_v23 }
 0x205   :  { %v118_v25 = vadd.f32 1e-05, %v116_v24 }
 0x206   :  { %v115_v26 = vpop.xlane.xlu1 %114 }
 0x207   :  { %186 = vrsqrt.f32 %v118_v25  ;;  %v117_v27 = vmul.f32 0.03125, %v115_v26 }
 0x209   :  { %v119_v28 = vadd.f32 1e-05, %v117_v27 }
 0x20b   :  { %188 = vrsqrt.f32 %v119_v28 }
 0x211   :  { %v187_v29 = vpop.eup %186 }
 0x212   :  { %v122_v31 = vmul.f32 %v187_v29, %v106_v15 }
 0x214   :  { %v131_v33 = vmul.f32 %v165_v30, %v122_v31 }
 0x215   :  { %v189_v34 = vpop.eup %188 }
 0x216   :  { %v123_v35 = vmul.f32 %v189_v34, %v107_v19  ;;  %v140_v36 = vadd.f32 %v166_v32, %v131_v33 }
 0x218   :  { %v132_v37 = vmul.f32 %v165_v30, %v123_v35  ;;  %142 = vst.msk [vmem:[#allocation2] sm:$0xff] %vm52_vm1, %v140_v36 }
 0x21a   :  { %v141_v38 = vadd.f32 %v166_v32, %v132_v37 }
 0x21c   :  { %143 = vst.msk [vmem:[#allocation2 + $0x8] sm:$0xff] %vm52_vm1, %v141_v38 }
 0x21d   :  { %201 = shalt.err (!%p198_p4)
}
 0x21e   :  { %s202_s30 = scalar_lea.hbm %s291_s5, 256 }
 0x21f   :  { %p203_p5 = scmp.ne.s32.totalorder %s291_s5, %s202_s30  ;;  %p206_p6 = scmp.lt.u32.totalorder %s202_s30, %s291_s5 }
 0x221   :  { %p208_p7 = pnand %p206_p6, %p203_p5 }
 0x223   :  { %211 = shalt.err (!%p208_p7)
}
 0x224   :  { %s217_s10 = smov 128   ;;  %s218_s11 = smov 8  }
 0x225   :  { %155 = dma.vmem_to_hbm [thread:$0]  %s150_s28, 256, %s291_s5, [#allocation3], %s217_s10, %s217_s10, %s218_s11  }
 0x226   :  { %212 = dma.done.wait [#allocation3], 256  }
 0x227   :  { %213 = vsyncadd [#allocation3], 4294967040 }
 0x228   :  { %159 = vsyncpa [#allocation3], 1 }

// kernel: attention_via_tasks_forward.2
= control target key start
LH: loop header
LB: loop body
LE: loop exit
PB: predicated region body
PF: predicated region fallthrough
CT: control target
= control target key end

     0   :  { %v1301_v0 = vmov 0.0   ;;  %vm1302_vm0 = vmmov 0   ;;  %vm50_vm1 = vcmask 261120   ;;  %vm169_vm2 = vcmask 64512   ;;  %s1305_s13 = smov 104   ;;  %s1306_s14 = smov 88   ;;  %s1568_s4 = inlined_call_operand.vmem [shape: bf16[32,64], index: 4, kind: input, shape index: {}]   ;;  %s1569_s2 = inlined_call_operand.vmem [shape: bf16[32,32], index: 2, kind: input, shape index: {}]   ;;  %s1570_s1 = inlined_call_operand.vmem [shape: f32[2,8,32], index: 1, kind: input, shape index: {}]   ;;  %s1571_s0 = inlined_call_operand.vmem [shape: f32[2,8,32], index: 0, kind: input, shape index: {}]   ;;  %s1572_s3 = inlined_call_operand.vmem [shape: f32[1,32], index: 3, kind: input, shape index: {}]   ;;  %s1573_s5 = inlined_call_operand.vmem [shape: f32[1,64], index: 5, kind: input, shape index: {}]   ;;  %s1574_s6 = inlined_call_operand.vmem [shape: bf16[4,2,8,8], index: 6, kind: output, shape index: {}]  }
   0x1   :  { %1152 = vmatprep.subr.bf16.mxu1 %v1301_v0  ;;  %v1265_v1 = vld [vmem:[%s1568_s4] sm:$0xff]   ;;  %1144 = vmatprep.subr.bf16.mxu0 %v1301_v0  ;;  %v1267_v3 = vld [vmem:[%s1568_s4 + $0x8] sm:$0xff]   ;;  %s1307_s15 = smov 96   ;;  %vm232_vm3 = vcmask 1043456   ;;  %s1308_s16 = smov 80   ;;  %vm279_vm4 = vcmask 60416  }
   0x2   :  { %v1266_v2 = vld [vmem:[%s1569_s2] sm:$0xff]   ;;  %1156 = vmatprep.mubr.msk.bf16.mxu1 %vm1302_vm0, %v1301_v0  ;;  %1148 = vmatprep.mubr.msk.bf16.mxu0 %vm1302_vm0, %v1301_v0  ;;  %v1268_v4 = vld [vmem:[%s1569_s2 + $0x8] sm:$0xff]   ;;  %s1309_s17 = smov 72  }
   0x3   :  { %1153 = vmatpush3.bf16.msra.mxu1 %v1265_v1  ;;  %1145 = vmatpush3.bf16.msra.mxu0 %v1266_v2  ;;  %v98_v5 = vld [vmem:[%s1570_s1] sm:$0xff]  ;;  %v99_v6 = vld [vmem:[%s1570_s1 + $0x8] sm:$0xff] }
   0x4   :  { %1154 = vmatprep.subr.bf16.mxu1 %v1301_v0  ;;  %1146 = vmatprep.subr.bf16.mxu0 %v1301_v0  ;;  %v24_v7 = vld [vmem:[%s1571_s0] sm:$0xff]  ;;  %v100_v8 = vpack.c.bf16 %v99_v6, %v98_v5  ;;  %v25_v9 = vld [vmem:[%s1571_s0 + $0x8] sm:$0xff] }
   0x5   :  { %v26_v10 = vpack.c.bf16 %v25_v9, %v24_v7  ;;  %v1075_v11 = vld [vmem:[%s1572_s3] ss:$0 sm:$0xff]  ;;  %s1303_s3 = smov 112  }
   0x6   :  { %v1079_v12 = vld [vmem:[%s1573_s5] ss:$0 sm:$0xff]  ;;  %s1304_s5 = smov 120  }
   0x7   :  { %1155 = vmatpush3.bf16.msra.mxu1 %v1267_v3  ;;  %1147 = vmatpush3.bf16.msra.mxu0 %v1268_v4 }
   0x8   :  { %1166 = vmatprep.subr.bf16.mxu1 %v1301_v0  ;;  %1160 = vmatprep.subr.bf16.mxu0 %v1301_v0 }
   0xa   :  { %1157 = vmatmul.mubr.msk.bf16.vlgmr.msra.gmra.mrb[0].mxu1 %vm50_vm1, %v100_v8  ;;  %1149 = vmatmul.mubr.msk.bf16.vlgmr.msra.gmra.mrb[0].mxu0 %vm50_vm1, %v26_v10 }
   0xb   :  { %1168 = vmatprep.mubr.msk.bf16.mxu1 %vm1302_vm0, %v1301_v0  ;;  %1162 = vmatprep.mubr.msk.bf16.mxu0 %vm1302_vm0, %v1301_v0 }
  0xdd   :  { %v161_v13 = vpop.f32.mrb[0].mxu1  ;;  %v88_v15 = vpop.f32.mrb[0].mxu0 }
  0xde   :  { %v1158_v14 = vpop.f32.mrb[1].mxu1  ;;  %v89_v16 = vadd.f32 %v1075_v11, %v88_v15  ;;  %v1150_v18 = vpop.f32.mrb[1].mxu0  ;;  %v162_v19 = vadd.f32 %v1079_v12, %v161_v13 }
  0xdf   :  { %v164_v17 = vpop.f32.mrb[2].mxu1  ;;  %v91_v22 = vpop.f32.mrb[2].mxu0 }
  0xe0   :  { %v165_v20 = vadd.f32 %v1079_v12, %v164_v17  ;;  %v1159_v21 = vpop.f32.mrb[3].mxu1  ;;  %v95_v23 = vmul.f32 0.35355338, %v89_v16  ;;  %v92_v24 = vadd.f32 %v1075_v11, %v91_v22  ;;  %v1151_v25 = vpop.f32.mrb[3].mxu0 }
  0xe2   :  { %v1389_v26 = vpack.c.bf16 %v165_v20, %v162_v19  ;;  %v96_v27 = vmul.f32 0.35355338, %v92_v24 }
  0xe4   :  { %397 = vrot.lane.b32.xlu1 %v1389_v26, %s1303_s3  ;;  %284 = vrot.lane.b32.xlu0 %v1389_v26, %s1304_s5  ;;  %v174_v28 = vsel %vm169_vm2, %v1389_v26, 0  ;;  %v97_v29 = vpack.c.bf16 %v96_v27, %v95_v23  ;;  %v1399_v30 = vrot.slane %v1389_v26, 4 }
  0xe5   :  { %1161 = vmatpush3.bf16.xpose.msra.mxu0 %v174_v28 }
  0xe6   :  { %1172 = vmatprep.subr.bf16.mxu0 %v1301_v0  ;;  %v621_v31 = vrot.slane %v97_v29, 4  ;;  %v627_v46 = vsel %vm169_vm2, %v1399_v30, 0 }
  0xe8   :  { %395 = vrot.lane.b32.xlu1 %v97_v29, %s1303_s3  ;;  %282 = vrot.lane.b32.xlu0 %v97_v29, %s1304_s5 }
  0xec   :  { %508 = vrot.lane.b32.xlu1 %v97_v29, %s1305_s13  ;;  %510 = vrot.lane.b32.xlu0 %v1389_v26, %s1305_s13 }
  0xed   :  { %1163 = vmatmul.mubr.msk.bf16.vlgmr.msra.gmra.mrb[4].mxu0 %vm169_vm2, %v97_v29 }
  0xee   :  { %1174 = vmatprep.mubr.msk.bf16.mxu0 %vm1302_vm0, %v1301_v0 }
  0xf0   :  { %734 = vrot.lane.b32.xlu0 %v1399_v30, %s1304_s5  ;;  %732 = vrot.lane.b32.xlu1 %v621_v31, %s1304_s5 }
  0xf4   :  { %847 = vrot.lane.b32.xlu0 %v1399_v30, %s1303_s3  ;;  %845 = vrot.lane.b32.xlu1 %v621_v31, %s1303_s3 }
  0xf8   :  { %960 = vrot.lane.b32.xlu0 %v1399_v30, %s1305_s13  ;;  %958 = vrot.lane.b32.xlu1 %v621_v31, %s1305_s13 }
  0xfc   :  { %342 = vrot.lane.b32.xlu0 %v1389_v26, %s1306_s14  ;;  %227 = vrot.lane.b32.xlu1 %v1389_v26, %s1307_s15 }
 0x156   :  { %v398_v32 = vpop.permute.xlu1 %397  ;;  %v285_v33 = vpop.permute.xlu0 %284 }
 0x157   :  { %v290_v34 = vsel %vm169_vm2, %v285_v33, 0  ;;  %v403_v38 = vsel %vm169_vm2, %v398_v32, 0 }
 0x158   :  { %1173 = vmatpush3.bf16.xpose.msra.mxu0 %v290_v34 }
 0x159   :  { %1184 = vmatprep.subr.bf16.mxu0 %v1301_v0 }
 0x15a   :  { %v396_v35 = vpop.permute.xlu1 %395  ;;  %v283_v36 = vpop.permute.xlu0 %282 }
 0x15e   :  { %v509_v37 = vpop.permute.xlu1 %508  ;;  %v511_v40 = vpop.permute.xlu0 %510 }
 0x15f   :  { %1175 = vmatmul.mubr.msk.bf16.vlgmr.msra.gmra.mrb[8].mxu0 %vm169_vm2, %v283_v36  ;;  %v516_v42 = vsel %vm169_vm2, %v511_v40, 0 }
 0x160   :  { %1185 = vmatpush3.bf16.xpose.msra.mxu0 %v403_v38  ;;  %1186 = vmatprep.mubr.msk.bf16.mxu0 %vm1302_vm0, %v1301_v0 }
 0x161   :  { %1196 = vmatprep.subr.bf16.mxu0 %v1301_v0 }
 0x162   :  { %v733_v39 = vpop.permute.xlu1 %732  ;;  %v735_v47 = vpop.permute.xlu0 %734 }
 0x163   :  { %v740_v48 = vsel %vm169_vm2, %v735_v47, 0 }
 0x166   :  { %v846_v41 = vpop.permute.xlu1 %845  ;;  %v848_v49 = vpop.permute.xlu0 %847 }
 0x167   :  { %1187 = vmatmul.mubr.msk.bf16.vlgmr.msra.gmra.mrb[12].mxu0 %vm169_vm2, %v396_v35  ;;  %v853_v50 = vsel %vm169_vm2, %v848_v49, 0 }
 0x168   :  { %1197 = vmatpush3.bf16.xpose.msra.mxu0 %v516_v42  ;;  %1198 = vmatprep.mubr.msk.bf16.mxu0 %vm1302_vm0, %v1301_v0 }
 0x169   :  { %1208 = vmatprep.subr.bf16.mxu0 %v1301_v0 }
 0x16a   :  { %v959_v43 = vpop.permute.xlu1 %958  ;;  %v961_v51 = vpop.permute.xlu0 %960 }
 0x16b   :  { %v966_v52 = vsel %vm169_vm2, %v961_v51, 0 }
 0x16e   :  { %v228_v44 = vpop.permute.xlu1 %227  ;;  %v343_v11 = vpop.permute.xlu0 %342 }
 0x16f   :  { %v234_v45 = vsel %vm232_vm3, %v228_v44, 0  ;;  %1199 = vmatmul.mubr.msk.bf16.vlgmr.msra.gmra.mrb[16].mxu0 %vm169_vm2, %v509_v37 }
 0x170   :  { %1167 = vmatpush3.bf16.msra.mxu1 %v234_v45  ;;  %1209 = vmatpush3.bf16.xpose.msra.mxu0 %v627_v46 }
 0x171   :  { %1210 = vmatprep.mubr.msk.bf16.mxu0 %vm1302_vm0, %v1301_v0  ;;  %1220 = vmatprep.subr.bf16.mxu0 %v1301_v0 }
 0x172   :  { %1178 = vmatprep.subr.bf16.mxu1 %v1301_v0 }
 0x177   :  { %1211 = vmatmul.mubr.msk.bf16.vlgmr.msra.gmra.mrb[20].mxu0 %vm169_vm2, %v621_v31  ;;  %v348_v31 = vsel %vm232_vm3, %v343_v11, 0 }
 0x178   :  { %1221 = vmatpush3.bf16.xpose.msra.mxu0 %v740_v48  ;;  %1222 = vmatprep.mubr.msk.bf16.mxu0 %vm1302_vm0, %v1301_v0 }
 0x179   :  { %1232 = vmatprep.subr.bf16.mxu0 %v1301_v0 }
 0x17f   :  { %1223 = vmatmul.mubr.msk.bf16.vlgmr.msra.gmra.mrb[24].mxu0 %vm169_vm2, %v733_v39 }
 0x180   :  { %1233 = vmatpush3.bf16.xpose.msra.mxu0 %v853_v50  ;;  %1234 = vmatprep.mubr.msk.bf16.mxu0 %vm1302_vm0, %v1301_v0 }
 0x181   :  { %1244 = vmatprep.subr.bf16.mxu0 %v1301_v0 }
 0x187   :  { %1235 = vmatmul.mubr.msk.bf16.vlgmr.msra.gmra.mrb[28].mxu0 %vm169_vm2, %v846_v41 }
 0x188   :  { %1245 = vmatpush3.bf16.xpose.msra.mxu0 %v966_v52  ;;  %1246 = vmatprep.mubr.msk.bf16.mxu0 %vm1302_vm0, %v1301_v0 }
 0x18f   :  { %1247 = vmatmul.mubr.msk.bf16.vlgmr.msra.gmra.mrb[32].mxu0 %vm169_vm2, %v959_v43 }
 0x1c0   :  { %v210_v53 = vpop.f32.mrb[4].mxu0 }
 0x1c1   :  { %v1164_v54 = vpop.f32.mrb[5].mxu0  ;;  %v216_v55 = vsel %vm169_vm2, %v210_v53, -inf }
 0x1c2   :  { %217 = vmax.xlane.f32.xlu0 %v216_v55  ;;  %v213_v56 = vpop.f32.mrb[6].mxu0 }
 0x1c3   :  { %v1165_v57 = vpop.f32.mrb[7].mxu0 }
 0x1d8   :  { %455 = vrot.lane.b32.xlu0 %v1389_v26, %s1308_s16 }
 0x232   :  { %v1448_v58 = vpop.f32.mrb[8].mxu0 }
 0x233   :  { %v1176_v59 = vpop.f32.mrb[9].mxu0  ;;  %v332_v60 = vsel %vm169_vm2, %v1448_v58, -inf }
 0x234   :  { %333 = vmax.xlane.f32.xlu1 %v332_v60  ;;  %v329_v61 = vpop.f32.mrb[10].mxu0 }
 0x235   :  { %v1177_v62 = vpop.f32.mrb[11].mxu0 }
 0x23a   :  { %v1452_v63 = vpop.f32.mrb[12].mxu0 }
 0x23b   :  { %v1188_v1 = vpop.f32.mrb[13].mxu0  ;;  %v445_v2 = vsel %vm169_vm2, %v1452_v63, -inf }
 0x23c   :  { %446 = vmax.xlane.f32.xlu0 %v445_v2  ;;  %v442_v3 = vpop.f32.mrb[14].mxu0 }
 0x23d   :  { %v1189_v4 = vpop.f32.mrb[15].mxu0 }
 0x242   :  { %v1456_v5 = vpop.f32.mrb[16].mxu0 }
 0x243   :  { %v1200_v6 = vpop.f32.mrb[17].mxu0  ;;  %v558_v7 = vsel %vm169_vm2, %v1456_v5, -inf }
 0x244   :  { %559 = vmax.xlane.f32.xlu0 %v558_v7  ;;  %v555_v8 = vpop.f32.mrb[18].mxu0 }
 0x245   :  { %568 = vrot.lane.b32.xlu1 %v1389_v26, %s1309_s17  ;;  %v1201_v9 = vpop.f32.mrb[19].mxu0 }
 0x24a   :  { %v1462_v10 = vpop.f32.mrb[20].mxu0 }
 0x24b   :  { %v1212_v12 = vpop.f32.mrb[21].mxu0  ;;  %v669_v13 = vsel %vm169_vm2, %v1462_v10, -inf }
 0x24c   :  { %670 = vmax.xlane.f32.xlu0 %v669_v13  ;;  %v666_v14 = vpop.f32.mrb[22].mxu0 }
 0x24d   :  { %v1213_v15 = vpop.f32.mrb[23].mxu0 }
 0x24f   :  { %v218_v16 = vpop.xlane.xlu0 %217 }
 0x250   :  { %v219_v17 = vsub.f32 %v210_v53, %v218_v16 }
 0x252   :  { %v220_v18 = vmul.f32 1.442695, %v219_v17  ;;  %v1466_v19 = vpop.f32.mrb[24].mxu0 }
 0x253   :  { %v1224_v20 = vpop.f32.mrb[25].mxu0  ;;  %v782_v37 = vsel %vm169_vm2, %v1466_v19, -inf  ;;  %v456_v42 = vpop.permute.xlu0 %455 }
 0x254   :  { %1269 = vpow2.f32 %v220_v18  ;;  %v779_v21 = vpop.f32.mrb[26].mxu0  ;;  %v461_v50 = vsel %vm232_vm3, %v456_v42, 0 }
 0x255   :  { %v1225_v22 = vpop.f32.mrb[27].mxu0 }
 0x25a   :  { %v1468_v23 = vpop.f32.mrb[28].mxu0 }
 0x25b   :  { %v1236_v24 = vpop.f32.mrb[29].mxu0  ;;  %v895_v25 = vsel %vm169_vm2, %v1468_v23, -inf }
 0x25c   :  { %896 = vmax.xlane.f32.xlu0 %v895_v25  ;;  %v892_v26 = vpop.f32.mrb[30].mxu0 }
 0x25d   :  { %v1237_v27 = vpop.f32.mrb[31].mxu0 }
 0x25e   :  { %v1270_v28 = vpop.eup %1269 }
 0x25f   :  { %v225_v29 = vpack.c.bf16 %v1270_v28, %v1270_v28  ;;  %v222_v38 = vsel %vm169_vm2, %v1270_v28, 0.0 }
 0x261   :  { %1169 = vmatmul.mubr.msk.bf16.vlgmr.msra.gmra.mrb[4].mxu1 %vm169_vm2, %v225_v29 }
 0x262   :  { %1179 = vmatpush3.bf16.msra.mxu1 %v348_v31  ;;  %v1474_v32 = vpop.f32.mrb[32].mxu0  ;;  %1180 = vmatprep.mubr.msk.bf16.mxu1 %vm1302_vm0, %v1301_v0 }
 0x263   :  { %v1248_v33 = vpop.f32.mrb[33].mxu0  ;;  %v1008_v34 = vsel %vm169_vm2, %v1474_v32, -inf  ;;  %1190 = vmatprep.subr.bf16.mxu1 %v1301_v0 }
 0x264   :  { %1009 = vmax.xlane.f32.xlu0 %v1008_v34  ;;  %v1005_v35 = vpop.f32.mrb[34].mxu0 }
 0x265   :  { %v1249_v36 = vpop.f32.mrb[35].mxu0 }
 0x269   :  { %783 = vmax.xlane.f32.xlu1 %v782_v37 }
 0x27a   :  { %792 = vrot.lane.b32.xlu1 %v1399_v30, %s1306_s14  ;;  %679 = vrot.lane.b32.xlu0 %v1399_v30, %s1307_s15 }
 0x27e   :  { %905 = vrot.lane.b32.xlu1 %v1399_v30, %s1308_s16 }
 0x282   :  { %1018 = vrot.lane.b32.xlu1 %v1399_v30, %s1309_s17 }
 0x2a6   :  { %223 = vadd.xlane.f32.xlu1 %v222_v38 }
 0x2c1   :  { %v334_v39 = vpop.xlane.xlu1 %333 }
 0x2c2   :  { %v335_v40 = vsub.f32 %v1448_v58, %v334_v39 }
 0x2c4   :  { %v336_v41 = vmul.f32 1.442695, %v335_v40 }
 0x2c5   :  { %v569_v53 = vpop.permute.xlu1 %568 }
 0x2c6   :  { %1271 = vpow2.f32 %v336_v41  ;;  %v574_v58 = vsel %vm232_vm3, %v569_v53, 0 }
 0x2c9   :  { %v447_v43 = vpop.xlane.xlu0 %446 }
 0x2ca   :  { %v448_v44 = vsub.f32 %v1452_v63, %v447_v43 }
 0x2cc   :  { %v449_v45 = vmul.f32 1.442695, %v448_v44 }
 0x2ce   :  { %1273 = vpow2.f32 %v449_v45 }
 0x2d0   :  { %v1272_v46 = vpop.eup %1271 }
 0x2d1   :  { %v560_v47 = vpop.xlane.xlu0 %559  ;;  %v338_v48 = vsel %vm169_vm2, %v1272_v46, 0.0  ;;  %v341_v49 = vpack.c.bf16 %v1272_v46, %v1272_v46 }
 0x2d2   :  { %v561_v30 = vsub.f32 %v1456_v5, %v560_v47  ;;  %339 = vadd.xlane.f32.xlu0 %v338_v48 }
 0x2d3   :  { %1181 = vmatmul.mubr.msk.bf16.vlgmr.msra.gmra.mrb[8].mxu1 %vm169_vm2, %v341_v49 }
 0x2d4   :  { %v562_v51 = vmul.f32 1.442695, %v561_v30  ;;  %1191 = vmatpush3.bf16.msra.mxu1 %v461_v50  ;;  %1192 = vmatprep.mubr.msk.bf16.mxu1 %vm1302_vm0, %v1301_v0 }
 0x2d5   :  { %1202 = vmatprep.subr.bf16.mxu1 %v1301_v0 }
 0x2d6   :  { %1275 = vpow2.f32 %v562_v51 }
 0x2d8   :  { %v1274_v52 = vpop.eup %1273 }
 0x2d9   :  { %v671_v54 = vpop.xlane.xlu0 %670  ;;  %v451_v55 = vsel %vm169_vm2, %v1274_v52, 0.0  ;;  %v454_v56 = vpack.c.bf16 %v1274_v52, %v1274_v52 }
 0x2da   :  { %v672_v57 = vsub.f32 %v1462_v10, %v671_v54  ;;  %452 = vadd.xlane.f32.xlu1 %v451_v55 }
 0x2db   :  { %1193 = vmatmul.mubr.msk.bf16.vlgmr.msra.gmra.mrb[12].mxu1 %vm169_vm2, %v454_v56 }
 0x2dc   :  { %v673_v59 = vmul.f32 1.442695, %v672_v57  ;;  %1203 = vmatpush3.bf16.msra.mxu1 %v574_v58  ;;  %1204 = vmatprep.mubr.msk.bf16.mxu1 %vm1302_vm0, %v1301_v0 }
 0x2dd   :  { %1214 = vmatprep.subr.bf16.mxu1 %v1301_v0 }
 0x2de   :  { %1277 = vpow2.f32 %v673_v59 }
 0x2e0   :  { %v1276_v60 = vpop.eup %1275 }
 0x2e1   :  { %v564_v61 = vsel %vm169_vm2, %v1276_v60, 0.0  ;;  %v567_v62 = vpack.c.bf16 %v1276_v60, %v1276_v60 }
 0x2e2   :  { %565 = vadd.xlane.f32.xlu0 %v564_v61 }
 0x2e3   :  { %1205 = vmatmul.mubr.msk.bf16.vlgmr.msra.gmra.mrb[16].mxu1 %vm169_vm2, %v567_v62 }
 0x2e4   :  { %1216 = vmatprep.mubr.msk.bf16.mxu1 %vm1302_vm0, %v1301_v0 }
 0x2e8   :  { %v1278_v63 = vpop.eup %1277 }
 0x2e9   :  { %v897_v1 = vpop.xlane.xlu0 %896  ;;  %v675_v2 = vsel %vm169_vm2, %v1278_v63, 0.0  ;;  %v678_v12 = vpack.c.bf16 %v1278_v63, %v1278_v63 }
 0x2ea   :  { %v898_v3 = vsub.f32 %v1468_v23, %v897_v1  ;;  %676 = vadd.xlane.f32.xlu1 %v675_v2 }
 0x2ec   :  { %v899_v4 = vmul.f32 1.442695, %v898_v3 }
 0x2ee   :  { %1279 = vpow2.f32 %v899_v4 }
 0x2f1   :  { %v1010_v5 = vpop.xlane.xlu0 %1009 }
 0x2f2   :  { %v1011_v6 = vsub.f32 %v1474_v32, %v1010_v5 }
 0x2f4   :  { %v1012_v13 = vmul.f32 1.442695, %v1011_v6 }
 0x2f5   :  { %v680_v7 = vpop.permute.xlu0 %679 }
 0x2f6   :  { %v685_v8 = vsel %vm232_vm3, %v680_v7, 0  ;;  %v784_v9 = vpop.xlane.xlu1 %783 }
 0x2f7   :  { %v785_v10 = vsub.f32 %v1466_v19, %v784_v9  ;;  %1215 = vmatpush3.bf16.msra.mxu1 %v685_v8 }
 0x2f8   :  { %v1280_v11 = vpop.eup %1279  ;;  %1226 = vmatprep.subr.bf16.mxu1 %v1301_v0 }
 0x2f9   :  { %v786_v14 = vmul.f32 1.442695, %v785_v10  ;;  %v901_v15 = vsel %vm169_vm2, %v1280_v11, 0.0  ;;  %v904_v26 = vpack.c.bf16 %v1280_v11, %v1280_v11 }
 0x2fa   :  { %v793_v16 = vpop.permute.xlu1 %792  ;;  %902 = vadd.xlane.f32.xlu1 %v901_v15  ;;  %1217 = vmatmul.mubr.msk.bf16.vlgmr.msra.gmra.mrb[20].mxu1 %vm169_vm2, %v678_v12 }
 0x2fb   :  { %1281 = vpow2.f32 %v786_v14  ;;  %v798_v17 = vsel %vm232_vm3, %v793_v16, 0  ;;  %1228 = vmatprep.mubr.msk.bf16.mxu1 %vm1302_vm0, %v1301_v0 }
 0x2fc   :  { %1227 = vmatpush3.bf16.msra.mxu1 %v798_v17  ;;  %1283 = vpow2.f32 %v1012_v13 }
 0x2fd   :  { %1238 = vmatprep.subr.bf16.mxu1 %v1301_v0 }
 0x2fe   :  { %v906_v19 = vpop.permute.xlu1 %905 }
 0x2ff   :  { %v911_v23 = vsel %vm232_vm3, %v906_v19, 0 }
 0x302   :  { %v1019_v25 = vpop.permute.xlu1 %1018 }
 0x303   :  { %v1024_v27 = vsel %vm232_vm3, %v1019_v25, 0 }
 0x305   :  { %v1282_v18 = vpop.eup %1281 }
 0x306   :  { %v788_v20 = vsel %vm169_vm2, %v1282_v18, 0.0  ;;  %v791_v21 = vpack.c.bf16 %v1282_v18, %v1282_v18  ;;  %v1284_v22 = vpop.eup %1283 }
 0x307   :  { %789 = vadd.xlane.f32.xlu0 %v788_v20  ;;  %v1014_v24 = vsel %vm169_vm2, %v1284_v22, 0.0  ;;  %v1017_v28 = vpack.c.bf16 %v1284_v22, %v1284_v22 }
 0x308   :  { %1229 = vmatmul.mubr.msk.bf16.vlgmr.msra.gmra.mrb[24].mxu1 %vm169_vm2, %v791_v21 }
 0x309   :  { %1239 = vmatpush3.bf16.msra.mxu1 %v911_v23  ;;  %1240 = vmatprep.mubr.msk.bf16.mxu1 %vm1302_vm0, %v1301_v0 }
 0x30a   :  { %1250 = vmatprep.subr.bf16.mxu1 %v1301_v0 }
 0x30b   :  { %1015 = vadd.xlane.f32.xlu0 %v1014_v24 }
 0x310   :  { %1241 = vmatmul.mubr.msk.bf16.vlgmr.msra.gmra.mrb[28].mxu1 %vm169_vm2, %v904_v26 }
 0x311   :  { %1251 = vmatpush3.bf16.msra.mxu1 %v1024_v27  ;;  %1252 = vmatprep.mubr.msk.bf16.mxu1 %vm1302_vm0, %v1301_v0 }
 0x318   :  { %1253 = vmatmul.mubr.msk.bf16.vlgmr.msra.gmra.mrb[32].mxu1 %vm169_vm2, %v1017_v28 }
 0x333   :  { %v224_v29 = vpop.xlane.xlu1 %223 }
 0x334   :  { %v270_v31 = vpop.f32.mrb[4].mxu1  ;;  %1285 = vrcp.f32 %v224_v29 }
 0x335   :  { %v1170_v32 = vpop.f32.mrb[5].mxu1 }
 0x336   :  { %v273_v33 = vpop.f32.mrb[6].mxu1 }
 0x337   :  { %v1171_v34 = vpop.f32.mrb[7].mxu1 }
 0x33e   :  { %v1286_v35 = vpop.eup %1285 }
 0x33f   :  { %v277_v36 = vmul.f32 %v1286_v35, %v270_v31 }
 0x341   :  { %v278_v37 = vpack.c.bf16 %v277_v36, %v277_v36 }
 0x343   :  { %280 = vst.msk [vmem:[%s1574_s6] sm:$0xf] %vm279_vm4, %v278_v37 }
 0x35f   :  { %v340_v38 = vpop.xlane.xlu0 %339 }
 0x360   :  { %1287 = vrcp.f32 %v340_v38 }
 0x367   :  { %v453_v0 = vpop.xlane.xlu1 %452 }
 0x368   :  { %1289 = vrcp.f32 %v453_v0 }
 0x36a   :  { %v1288_v39 = vpop.eup %1287 }
 0x36f   :  { %v566_v44 = vpop.xlane.xlu0 %565 }
 0x370   :  { %1291 = vrcp.f32 %v566_v44 }
 0x372   :  { %v1290_v47 = vpop.eup %1289 }
 0x377   :  { %v677_v60 = vpop.xlane.xlu1 %676 }
 0x378   :  { %1293 = vrcp.f32 %v677_v60 }
 0x37a   :  { %v1292_v53 = vpop.eup %1291 }
 0x382   :  { %v1294_v61 = vpop.eup %1293 }
 0x387   :  { %v903_v6 = vpop.xlane.xlu1 %902 }
 0x394   :  { %v790_v63 = vpop.xlane.xlu0 %789 }
 0x395   :  { %1295 = vrcp.f32 %v790_v63 }
 0x396   :  { %1297 = vrcp.f32 %v903_v6 }
 0x398   :  { %v1016_v12 = vpop.xlane.xlu0 %1015 }
 0x399   :  { %1299 = vrcp.f32 %v1016_v12 }
 0x39f   :  { %v1296_v7 = vpop.eup %1295 }
 0x3a0   :  { %v1298_v15 = vpop.eup %1297 }
 0x3a3   :  { %v1300_v22 = vpop.eup %1299 }
 0x3a6   :  { %v384_v40 = vpop.f32.mrb[8].mxu1 }
 0x3a7   :  { %v391_v41 = vmul.f32 %v1288_v39, %v384_v40  ;;  %v1182_v42 = vpop.f32.mrb[9].mxu1 }
 0x3a8   :  { %v387_v43 = vpop.f32.mrb[10].mxu1 }
 0x3a9   :  { %v392_v45 = vpack.c.bf16 %v391_v41, %v391_v41  ;;  %v1183_v46 = vpop.f32.mrb[11].mxu1 }
 0x3ab   :  { %1087 = vst.msk [vmem:[%s1574_s6 + $0x8] sm:$0xf] %vm279_vm4, %v392_v45 }
 0x3ae   :  { %v497_v48 = vpop.f32.mrb[12].mxu1 }
 0x3af   :  { %v504_v49 = vmul.f32 %v1290_v47, %v497_v48  ;;  %v1194_v30 = vpop.f32.mrb[13].mxu1 }
 0x3b0   :  { %v500_v50 = vpop.f32.mrb[14].mxu1 }
 0x3b1   :  { %v505_v51 = vpack.c.bf16 %v504_v49, %v504_v49  ;;  %v1195_v52 = vpop.f32.mrb[15].mxu1 }
 0x3b3   :  { %1090 = vst.msk [vmem:[%s1574_s6 + $0x10] sm:$0xf] %vm279_vm4, %v505_v51 }
 0x3b6   :  { %v610_v54 = vpop.f32.mrb[16].mxu1 }
 0x3b7   :  { %v617_v55 = vmul.f32 %v1292_v53, %v610_v54  ;;  %v1206_v56 = vpop.f32.mrb[17].mxu1 }
 0x3b8   :  { %v613_v57 = vpop.f32.mrb[18].mxu1 }
 0x3b9   :  { %v618_v58 = vpack.c.bf16 %v617_v55, %v617_v55  ;;  %v1207_v59 = vpop.f32.mrb[19].mxu1 }
 0x3bb   :  { %1093 = vst.msk [vmem:[%s1574_s6 + $0x18] sm:$0xf] %vm279_vm4, %v618_v58 }
 0x3cd   :  { %v721_v62 = vpop.f32.mrb[20].mxu1 }
 0x3ce   :  { %v728_v1 = vmul.f32 %v1294_v61, %v721_v62  ;;  %v1218_v2 = vpop.f32.mrb[21].mxu1 }
 0x3cf   :  { %v724_v3 = vpop.f32.mrb[22].mxu1 }
 0x3d0   :  { %v729_v4 = vpack.c.bf16 %v728_v1, %v728_v1  ;;  %v1219_v5 = vpop.f32.mrb[23].mxu1 }
 0x3d2   :  { %1096 = vst.msk [vmem:[%s1574_s6 + $0x4] sm:$0xf] %vm279_vm4, %v729_v4 }
 0x3db   :  { %v834_v8 = vpop.f32.mrb[24].mxu1 }
 0x3dc   :  { %v841_v9 = vmul.f32 %v1296_v7, %v834_v8  ;;  %v1230_v10 = vpop.f32.mrb[25].mxu1 }
 0x3dd   :  { %v837_v11 = vpop.f32.mrb[26].mxu1 }
 0x3de   :  { %v842_v13 = vpack.c.bf16 %v841_v9, %v841_v9  ;;  %v1231_v14 = vpop.f32.mrb[27].mxu1 }
 0x3e0   :  { %1099 = vst.msk [vmem:[%s1574_s6 + $0xc] sm:$0xf] %vm279_vm4, %v842_v13 }
 0x3e3   :  { %v947_v16 = vpop.f32.mrb[28].mxu1 }
 0x3e4   :  { %v954_v17 = vmul.f32 %v1298_v15, %v947_v16  ;;  %v1242_v18 = vpop.f32.mrb[29].mxu1 }
 0x3e5   :  { %v950_v19 = vpop.f32.mrb[30].mxu1 }
 0x3e6   :  { %v955_v20 = vpack.c.bf16 %v954_v17, %v954_v17  ;;  %v1243_v21 = vpop.f32.mrb[31].mxu1 }
 0x3e8   :  { %1102 = vst.msk [vmem:[%s1574_s6 + $0x14] sm:$0xf] %vm279_vm4, %v955_v20 }
 0x3eb   :  { %v1060_v23 = vpop.f32.mrb[32].mxu1 }
 0x3ec   :  { %v1067_v24 = vmul.f32 %v1300_v22, %v1060_v23  ;;  %v1254_v25 = vpop.f32.mrb[33].mxu1 }
 0x3ed   :  { %v1063_v26 = vpop.f32.mrb[34].mxu1 }
 0x3ee   :  { %v1068_v27 = vpack.c.bf16 %v1067_v24, %v1067_v24  ;;  %v1255_v28 = vpop.f32.mrb[35].mxu1 }
 0x3f0   :  { %1105 = vst.msk [vmem:[%s1574_s6 + $0x1c] sm:$0xf] %vm279_vm4, %v1068_v27 }

</bundles_post_ra>
